<compile_context>
chip_gen: v5e
topology: v5e:2x2
jax: 0.10.0
libtpu: 0.0.40
codegen_flags: <defaults>
</compile_context>

<pallas_src>
import functools

import numpy as np
import jax
import jax.numpy as jnp
from jax import lax
from jax.experimental import pallas as pl
from jax.experimental.pallas import tpu as pltpu

_LANES = 128  # lane block: planes processed per grid step


def _pair(v):
    if isinstance(v, (tuple, list)):
        return int(v[0]), int(v[1])
    return int(v), int(v)


def _pow_p(x, p):
    # integer p -> integer_pow (matches torch.pow for negative bases and
    # avoids exp/log on negative inputs); fractional p -> lax.pow semantics.
    if float(p).is_integer():
        return lax.integer_pow(x, int(p))
    return x ** p


def _lp_pool_kernel(x_ref, o_ref, xp_ref, row_ref, *,
                    norm_type, kH, kW, sH, sW, Ho, Wo):
    # x_ref:   (Hp, Wp, Bc)  zero-padded planes, plane-batch on lanes
    # o_ref:   (Ho, Wo, Bc)
    # xp_ref:  (Hp, Wp, Bc)  f32 scratch holding x**p
    # row_ref: (Ho, Wp, Bc)  f32 scratch holding the H-pooled partial sums
    p = float(norm_type)

    # x**p once per element, accumulated in f32.
    xp_ref[...] = _pow_p(x_ref[...].astype(jnp.float32), p)

    # ---- Row (H) pooling: strided slices along the leading (H) axis. ----
    def hsl(di):
        return pl.ds(di, Ho) if sH == 1 else pl.ds(di, Ho, stride=sH)

    row_ref[...] = xp_ref[hsl(0), :, :]
    for di in range(1, kH):
        row_ref[...] += xp_ref[hsl(di), :, :]

    # ---- Column (W) pooling: strided slices along the sublane (W) axis. ----
    def wsl(dj):
        return pl.ds(dj, Wo) if sW == 1 else pl.ds(dj, Wo, stride=sW)

    s = row_ref[:, wsl(0), :]
    for dj in range(1, kW):
        s = s + row_ref[:, wsl(dj), :]

    inv = 1.0 / p
    if inv == 0.5:
        out = jnp.sqrt(s)          # common p=2 case
    elif inv == 1.0:
        out = s
    else:
        out = s ** inv
    o_ref[...] = out.astype(o_ref.dtype)


def padded_lp_pool2d(x, norm_type, kernel_size, stride=None, padding=0):
    norm_type = float(norm_type)
    kH, kW = _pair(kernel_size)
    sH, sW = _pair(stride if stride is not None else kernel_size)
    pH, pW = _pair(padding)

    N, C, H, W = x.shape
    Hp, Wp = H + 2 * pH, W + 2 * pW
    Ho = (Hp - kH) // sH + 1   # floor mode
    Wo = (Wp - kW) // sW + 1
    # TODO(synk): ceil_mode=True not implemented (module default is False).

    NC = N * C
    Bc = _LANES
    NCp = ((NC + Bc - 1) // Bc) * Bc

    # Channels-last internal layout: (Hp, Wp, NCp); plane batch -> lanes.
    # Zero padding (spatial + lane padding) is harmless: 0**p == 0 for p > 0.
    xt = jnp.transpose(x.reshape(NC, H, W), (1, 2, 0))        # (H, W, NC)
    xt = jnp.pad(xt, ((pH, pH), (pW, pW), (0, NCp - NC)))     # (Hp, Wp, NCp)

    kernel = functools.partial(
        _lp_pool_kernel, norm_type=norm_type,
        kH=kH, kW=kW, sH=sH, sW=sW, Ho=Ho, Wo=Wo)

    out = pl.pallas_call(
        kernel,
        out_shape=jax.ShapeDtypeStruct((Ho, Wo, NCp), x.dtype),
        grid_spec=pltpu.PrefetchScalarGridSpec(
            num_scalar_prefetch=0,
            grid=(NCp // Bc,),
            in_specs=[pl.BlockSpec((Hp, Wp, Bc), lambda i: (0, 0, i))],
            out_specs=pl.BlockSpec((Ho, Wo, Bc), lambda i: (0, 0, i)),
            scratch_shapes=[
                pltpu.VMEM((Hp, Wp, Bc), jnp.float32),   # x**p
                pltpu.VMEM((Ho, Wp, Bc), jnp.float32),   # H-pooled rows
            ]),
        compiler_params=pltpu.CompilerParams(
            dimension_semantics=("parallel",)),
    )(xt)

    out = out[:, :, :NC]                                   # drop lane padding
    return jnp.transpose(out, (2, 0, 1)).reshape(N, C, Ho, Wo)


def _reference(x, norm_type, kernel_size, stride=None, padding=0):
    """Pure-JAX reference mirroring the PyTorch forward."""
    p = float(norm_type)
    kH, kW = _pair(kernel_size)
    sH, sW = _pair(stride if stride is not None else kernel_size)
    pH, pW = _pair(padding)
    xp = x.astype(jnp.float32) ** p
    xp = jnp.pad(xp, ((0, 0), (0, 0), (pH, pH), (pW, pW)))
    s = lax.reduce_window(xp, 0.0, lax.add,
                          (1, 1, kH, kW), (1, 1, sH, sW), 'VALID')
    return (s ** (1.0 / p)).astype(x.dtype)


if __name__ == "__main__":
    key = jax.random.PRNGKey(0)
    x = jax.random.normal(key, (2, 4, 16, 16), dtype=jnp.float32)

    norm_type, kernel_size, stride, padding = 2, 3, 2, 1

    y = padded_lp_pool2d(x, norm_type, kernel_size, stride, padding)
    y = jax.block_until_ready(y)

    y_ref = _reference(x, norm_type, kernel_size, stride, padding)
    assert y.shape == y_ref.shape, (y.shape, y_ref.shape)
    np.testing.assert_allclose(np.asarray(y), np.asarray(y_ref),
                               rtol=1e-5, atol=1e-5)
    print("KERNEL_OK")
</pallas_src>

<mosaic_0001>
module attributes {stable_mosaic.version = 11 : i64} {
  func.func @_lp_pool_kernel(%arg0: i32, %arg1: memref<18x18x128xf32, #tpu.memory_space<vmem>>, %arg2: memref<8x8x128xf32, #tpu.memory_space<vmem>>, %arg3: memref<18x18x128xf32, #tpu.memory_space<vmem>>, %arg4: memref<8x18x128xf32, #tpu.memory_space<vmem>>) attributes {dimension_semantics = [#tpu.dimension_semantics<parallel>], iteration_bounds = array<i64: 1>, scalar_prefetch = 0 : i64, scratch_operands = 2 : i64, tpu.core_type = #tpu.core_type<tc>, window_params = [{transform_indices = @transform_0, window_bounds = array<i64: 18, 18, 128>}, {transform_indices = @transform_1, window_bounds = array<i64: 8, 8, 128>}]} {
    %c0 = arith.constant 0 : index
    %c0_0 = arith.constant 0 : index
    %c0_1 = arith.constant 0 : index
    %0 = vector.load %arg1[%c0, %c0_0, %c0_1] : memref<18x18x128xf32, #tpu.memory_space<vmem>>, vector<18x18x128xf32>
    %1 = arith.mulf %0, %0 : vector<18x18x128xf32>
    %c0_2 = arith.constant 0 : index
    %c0_3 = arith.constant 0 : index
    %c0_4 = arith.constant 0 : index
    %2 = vector.load %arg3[%c0_2, %c0_3, %c0_4] : memref<18x18x128xf32, #tpu.memory_space<vmem>>, vector<18x18x128xf32>
    tpu.vector_store %arg3[%c0_2, %c0_3, %c0_4], %1 {strides = array<i32>} : memref<18x18x128xf32, #tpu.memory_space<vmem>>, vector<18x18x128xf32>,
    %c0_5 = arith.constant 0 : index
    %c0_6 = arith.constant 0 : index
    %c0_7 = arith.constant 0 : index
    %3 = tpu.strided_load %arg3[%c0_5, %c0_6, %c0_7] {strides = array<i32: 2, 1, 1>} : memref<18x18x128xf32, #tpu.memory_space<vmem>>, vector<8x18x128xf32>
    %c0_8 = arith.constant 0 : index
    %c0_9 = arith.constant 0 : index
    %c0_10 = arith.constant 0 : index
    %4 = vector.load %arg4[%c0_8, %c0_9, %c0_10] : memref<8x18x128xf32, #tpu.memory_space<vmem>>, vector<8x18x128xf32>
    tpu.vector_store %arg4[%c0_8, %c0_9, %c0_10], %3 {strides = array<i32>} : memref<8x18x128xf32, #tpu.memory_space<vmem>>, vector<8x18x128xf32>,
    %c0_11 = arith.constant 0 : index
    %c0_12 = arith.constant 0 : index
    %c0_13 = arith.constant 0 : index
    %5 = vector.load %arg4[%c0_11, %c0_12, %c0_13] : memref<8x18x128xf32, #tpu.memory_space<vmem>>, vector<8x18x128xf32>
    %c1 = arith.constant 1 : index
    %c0_14 = arith.constant 0 : index
    %c0_15 = arith.constant 0 : index
    %6 = tpu.strided_load %arg3[%c1, %c0_14, %c0_15] {strides = array<i32: 2, 1, 1>} : memref<18x18x128xf32, #tpu.memory_space<vmem>>, vector<8x18x128xf32>
    %7 = arith.addf %5, %6 : vector<8x18x128xf32>
    %c0_16 = arith.constant 0 : index
    %c0_17 = arith.constant 0 : index
    %c0_18 = arith.constant 0 : index
    %8 = vector.load %arg4[%c0_16, %c0_17, %c0_18] : memref<8x18x128xf32, #tpu.memory_space<vmem>>, vector<8x18x128xf32>
    tpu.vector_store %arg4[%c0_16, %c0_17, %c0_18], %7 {strides = array<i32>} : memref<8x18x128xf32, #tpu.memory_space<vmem>>, vector<8x18x128xf32>,
    %c0_19 = arith.constant 0 : index
    %c0_20 = arith.constant 0 : index
    %c0_21 = arith.constant 0 : index
    %9 = vector.load %arg4[%c0_19, %c0_20, %c0_21] : memref<8x18x128xf32, #tpu.memory_space<vmem>>, vector<8x18x128xf32>
    %c2 = arith.constant 2 : index
    %c0_22 = arith.constant 0 : index
    %c0_23 = arith.constant 0 : index
    %10 = tpu.strided_load %arg3[%c2, %c0_22, %c0_23] {strides = array<i32: 2, 1, 1>} : memref<18x18x128xf32, #tpu.memory_space<vmem>>, vector<8x18x128xf32>
    %11 = arith.addf %9, %10 : vector<8x18x128xf32>
    %c0_24 = arith.constant 0 : index
    %c0_25 = arith.constant 0 : index
    %c0_26 = arith.constant 0 : index
    %12 = vector.load %arg4[%c0_24, %c0_25, %c0_26] : memref<8x18x128xf32, #tpu.memory_space<vmem>>, vector<8x18x128xf32>
    tpu.vector_store %arg4[%c0_24, %c0_25, %c0_26], %11 {strides = array<i32>} : memref<8x18x128xf32, #tpu.memory_space<vmem>>, vector<8x18x128xf32>,
    %c0_27 = arith.constant 0 : index
    %c0_28 = arith.constant 0 : index
    %c0_29 = arith.constant 0 : index
    %13 = tpu.strided_load %arg4[%c0_27, %c0_28, %c0_29] {strides = array<i32: 1, 2, 1>} : memref<8x18x128xf32, #tpu.memory_space<vmem>>, vector<8x8x128xf32>
    %c0_30 = arith.constant 0 : index
    %c1_31 = arith.constant 1 : index
    %c0_32 = arith.constant 0 : index
    %14 = tpu.strided_load %arg4[%c0_30, %c1_31, %c0_32] {strides = array<i32: 1, 2, 1>} : memref<8x18x128xf32, #tpu.memory_space<vmem>>, vector<8x8x128xf32>
    %15 = arith.addf %13, %14 : vector<8x8x128xf32>
    %c0_33 = arith.constant 0 : index
    %c2_34 = arith.constant 2 : index
    %c0_35 = arith.constant 0 : index
    %16 = tpu.strided_load %arg4[%c0_33, %c2_34, %c0_35] {strides = array<i32: 1, 2, 1>} : memref<8x18x128xf32, #tpu.memory_space<vmem>>, vector<8x8x128xf32>
    %17 = arith.addf %15, %16 : vector<8x8x128xf32>
    %18 = math.sqrt %17 : vector<8x8x128xf32>
    %c0_36 = arith.constant 0 : index
    %c0_37 = arith.constant 0 : index
    %c0_38 = arith.constant 0 : index
    %19 = vector.load %arg2[%c0_36, %c0_37, %c0_38] : memref<8x8x128xf32, #tpu.memory_space<vmem>>, vector<8x8x128xf32>
    tpu.vector_store %arg2[%c0_36, %c0_37, %c0_38], %18 {strides = array<i32>} : memref<8x8x128xf32, #tpu.memory_space<vmem>>, vector<8x8x128xf32>,
    return
  }
  func.func @transform_0(%arg0: i32) -> (i32, i32, i32) {
    %c0_i32 = arith.constant 0 : i32
    %c0_i32_0 = arith.constant 0 : i32
    %c0_i32_1 = arith.constant 0 : i32
    return %c0_i32, %c0_i32_0, %arg0 : i32, i32, i32
  }
  func.func @transform_1(%arg0: i32) -> (i32, i32, i32) {
    %c0_i32 = arith.constant 0 : i32
    %c0_i32_0 = arith.constant 0 : i32
    %c0_i32_1 = arith.constant 0 : i32
    return %c0_i32, %c0_i32_0, %arg0 : i32, i32, i32
  }
}

</mosaic_0001>

<bundles_post_ra>
// kernel: tpu_custom_call.1
= control target key start
LH: loop header
LB: loop body
LE: loop exit
PB: predicated region body
PF: predicated region fallthrough
CT: control target
= control target key end

     0   :  { %6 = vsyncpa [#allocation5], 0  ;;  %s905_s0 = inlined_call_operand.hbm [shape: f32[18,18,128], index: 0, kind: input, shape index: {}]   ;;  %s906_s1 = inlined_call_operand.hbm [shape: f32[8,8,128], index: 1, kind: output, shape index: {}]  }
   0x1   :  { %7 = vsyncpa [#allocation6], 0  ;;  %s12_s8 = sshll.u32 %s905_s0, 4  ;;  %s687_s9 = smov [#allocation4]   ;;  %s13_s8 = int_to_ptr.hbm [resolvable:$true] %s12_s8 }
   0x2   :  { %s14_s10 = sshll.u32 %s687_s9, 4  ;;  %s688_s11 = smov 128   ;;  %s15_s10 = int_to_ptr.vmem [resolvable:$true] %s14_s10 }
   0x3   :  { %s689_s12 = smov 8  }
   0x4   :  { %20 = dma.hbm_to_vmem [thread:$0]  %s13_s8, 6912, %s15_s10, [#allocation5], %s688_s11, %s688_s11, %s689_s12  }
   0x5   :  { %683 = dma.done.wait [#allocation5], 6912  }
   0x6   :  { %684 = vsyncadd [#allocation5], 4294960384  ;;  %v25_v0 = vld [vmem:[#allocation4] sm:$0xff]  ;;  %v26_v1 = vld [vmem:[#allocation4 + $0x8] sm:$0xff]  ;;  %s690_s0 = smov [#allocation7]   ;;  %s602_s16 = sshll.u32 %s906_s1, 4  ;;  %s603_s16 = int_to_ptr.hbm [resolvable:$true] %s602_s16 }
   0x7   :  { %v27_v2 = vld [vmem:[#allocation4 + $0x10] sm:$0x3]  ;;  %v707_v3 = vmul.f32 %v25_v0, %v25_v0  ;;  %v33_v6 = vld [vmem:[#allocation4 + $0x40] sm:$0x3]  ;;  %v709_v7 = vmul.f32 %v26_v1, %v26_v1  ;;  %v32_v8 = vld [vmem:[#allocation4 + $0x38] sm:$0xff]  ;;  %s600_s13 = sshll.u32 %s690_s0, 4  ;;  %s601_s13 = int_to_ptr.vmem [resolvable:$true] %s600_s13 }
   0x8   :  { %v81_v4 = vmul.f32 %v27_v2, %v27_v2  ;;  %v31_v5 = vld [vmem:[#allocation4 + $0x30] sm:$0xff]  ;;  %v87_v10 = vmul.f32 %v33_v6, %v33_v6  ;;  %v37_v11 = vld [vmem:[#allocation4 + $0x60] sm:$0xff]  ;;  %v713_v13 = vmul.f32 %v32_v8, %v32_v8  ;;  %v38_v14 = vld [vmem:[#allocation4 + $0x68] sm:$0xff] }
   0x9   :  { %v711_v9 = vmul.f32 %v31_v5, %v31_v5  ;;  %v39_v12 = vld [vmem:[#allocation4 + $0x70] sm:$0x3]  ;;  %v715_v15 = vmul.f32 %v37_v11, %v37_v11  ;;  %v45_v18 = vld [vmem:[#allocation4 + $0xa0] sm:$0x3]  ;;  %v717_v19 = vmul.f32 %v38_v14, %v38_v14  ;;  %v44_v20 = vld [vmem:[#allocation4 + $0x98] sm:$0xff] }
   0xa   :  { %135 = vst [vmem:[#allocation2 + $0x10] sm:$0x3] %v81_v4  ;;  %v93_v16 = vmul.f32 %v39_v12, %v39_v12  ;;  %v43_v17 = vld [vmem:[#allocation4 + $0x90] sm:$0xff]  ;;  %v99_v22 = vmul.f32 %v45_v18, %v45_v18  ;;  %v49_v23 = vld [vmem:[#allocation4 + $0xc0] sm:$0xff]  ;;  %v721_v25 = vmul.f32 %v44_v20, %v44_v20  ;;  %v50_v26 = vld [vmem:[#allocation4 + $0xc8] sm:$0xff] }
   0xb   :  { %141 = vst [vmem:[#allocation2 + $0x108] sm:$0x3] %v87_v10  ;;  %v719_v21 = vmul.f32 %v43_v17, %v43_v17  ;;  %v51_v24 = vld [vmem:[#allocation4 + $0xd0] sm:$0x3]  ;;  %v723_v27 = vmul.f32 %v49_v23, %v49_v23  ;;  %v57_v30 = vld [vmem:[#allocation4 + $0x100] sm:$0x3]  ;;  %v725_v31 = vmul.f32 %v50_v26, %v50_v26 }
   0xc   :  { %147 = vst [vmem:[#allocation2 + $0x58] sm:$0x3] %v93_v16  ;;  %v105_v28 = vmul.f32 %v51_v24, %v51_v24  ;;  %v55_v29 = vld [vmem:[#allocation4 + $0xf0] sm:$0xff]  ;;  %v56_v32 = vld [vmem:[#allocation4 + $0xf8] sm:$0xff]  ;;  %v111_v34 = vmul.f32 %v57_v30, %v57_v30  ;;  %v61_v35 = vld [vmem:[#allocation4 + $0x120] sm:$0xff] }
   0xd   :  { %153 = vst [vmem:[#allocation2 + $0x1a0] sm:$0x3] %v99_v22  ;;  %v727_v33 = vmul.f32 %v55_v29, %v55_v29  ;;  %v63_v36 = vld [vmem:[#allocation4 + $0x130] sm:$0x3]  ;;  %v729_v37 = vmul.f32 %v56_v32, %v56_v32  ;;  %v62_v38 = vld [vmem:[#allocation4 + $0x128] sm:$0xff]  ;;  %v731_v39 = vmul.f32 %v61_v35, %v61_v35  ;;  %v68_v44 = vld [vmem:[#allocation4 + $0x158] sm:$0xff] }
   0xe   :  { %159 = vst [vmem:[#allocation2 + $0x28] sm:$0x3] %v105_v28  ;;  %v117_v40 = vmul.f32 %v63_v36, %v63_v36  ;;  %v67_v41 = vld [vmem:[#allocation4 + $0x150] sm:$0xff]  ;;  %v69_v42 = vld [vmem:[#allocation4 + $0x160] sm:$0x3]  ;;  %v733_v43 = vmul.f32 %v62_v38, %v62_v38  ;;  %v28_v47 = vld [vmem:[#allocation4 + $0x18] sm:$0xff]  ;;  %v737_v49 = vmul.f32 %v68_v44, %v68_v44 }
   0xf   :  { %165 = vst [vmem:[#allocation2 + $0x50] sm:$0x3] %v111_v34  ;;  %v735_v45 = vmul.f32 %v67_v41, %v67_v41  ;;  %v123_v46 = vmul.f32 %v69_v42, %v69_v42  ;;  %v30_v48 = vld [vmem:[#allocation4 + $0x28] sm:$0x3]  ;;  %v29_v50 = vld [vmem:[#allocation4 + $0x20] sm:$0xff]  ;;  %v739_v51 = vmul.f32 %v28_v47, %v28_v47  ;;  %v35_v56 = vld [vmem:[#allocation4 + $0x50] sm:$0xff] }
  0x10   :  { %171 = vst [vmem:[#allocation2 + $0xc8] sm:$0x3] %v117_v40  ;;  %v84_v52 = vmul.f32 %v30_v48, %v30_v48  ;;  %v34_v53 = vld [vmem:[#allocation4 + $0x48] sm:$0xff]  ;;  %v36_v54 = vld [vmem:[#allocation4 + $0x58] sm:$0x3]  ;;  %v741_v55 = vmul.f32 %v29_v50, %v29_v50  ;;  %v745_v61 = vmul.f32 %v35_v56, %v35_v56  ;;  %v41_v62 = vld [vmem:[#allocation4 + $0x80] sm:$0xff] }
  0x11   :  { %177 = vst [vmem:[#allocation2 + $0x8] sm:$0x3] %v123_v46  ;;  %v743_v57 = vmul.f32 %v34_v53, %v34_v53  ;;  %v90_v58 = vmul.f32 %v36_v54, %v36_v54  ;;  %v40_v59 = vld [vmem:[#allocation4 + $0x78] sm:$0xff]  ;;  %v42_v60 = vld [vmem:[#allocation4 + $0x88] sm:$0x3]  ;;  %v749_v4 = vmul.f32 %v41_v62, %v41_v62  ;;  %v47_v5 = vld [vmem:[#allocation4 + $0xb0] sm:$0xff] }
  0x12   :  { %138 = vst [vmem:[#allocation2 + $0x128] sm:$0x3] %v84_v52  ;;  %v747_v63 = vmul.f32 %v40_v59, %v40_v59  ;;  %v96_v0 = vmul.f32 %v42_v60, %v42_v60  ;;  %v46_v1 = vld [vmem:[#allocation4 + $0xa8] sm:$0xff]  ;;  %v48_v2 = vld [vmem:[#allocation4 + $0xb8] sm:$0x3]  ;;  %v753_v12 = vmul.f32 %v47_v5, %v47_v5  ;;  %v53_v14 = vld [vmem:[#allocation4 + $0xe0] sm:$0xff] }
  0x13   :  { %144 = vst [vmem:[#allocation2 + $0x118] sm:$0x3] %v90_v58  ;;  %v751_v6 = vmul.f32 %v46_v1, %v46_v1  ;;  %v102_v8 = vmul.f32 %v48_v2, %v48_v2  ;;  %v52_v10 = vld [vmem:[#allocation4 + $0xd8] sm:$0xff]  ;;  %v54_v11 = vld [vmem:[#allocation4 + $0xe8] sm:$0x3]  ;;  %v757_v22 = vmul.f32 %v53_v14, %v53_v14  ;;  %v59_v23 = vld [vmem:[#allocation4 + $0x110] sm:$0xff] }
  0x14   :  { %150 = vst [vmem:[#allocation2 + $0x130] sm:$0x3] %v96_v0  ;;  %v755_v16 = vmul.f32 %v52_v10, %v52_v10  ;;  %v108_v17 = vmul.f32 %v54_v11, %v54_v11  ;;  %v58_v18 = vld [vmem:[#allocation4 + $0x108] sm:$0xff]  ;;  %v60_v20 = vld [vmem:[#allocation4 + $0x118] sm:$0x3]  ;;  %v761_v30 = vmul.f32 %v59_v23, %v59_v23  ;;  %v65_v32 = vld [vmem:[#allocation4 + $0x140] sm:$0xff] }
  0x15   :  { %156 = vst [vmem:[#allocation2 + $0xe8] sm:$0x3] %v102_v8  ;;  %v759_v24 = vmul.f32 %v58_v18, %v58_v18  ;;  %v114_v26 = vmul.f32 %v60_v20, %v60_v20  ;;  %v64_v28 = vld [vmem:[#allocation4 + $0x138] sm:$0xff]  ;;  %v66_v29 = vld [vmem:[#allocation4 + $0x148] sm:$0x3]  ;;  %v765_v40 = vmul.f32 %v65_v32, %v65_v32  ;;  %v71_v41 = vld [vmem:[#allocation4 + $0x170] sm:$0xff] }
  0x16   :  { %162 = vst [vmem:[#allocation2 + $0xb8] sm:$0x3] %v108_v17  ;;  %v763_v34 = vmul.f32 %v64_v28, %v64_v28  ;;  %v120_v35 = vmul.f32 %v66_v29, %v66_v29  ;;  %v70_v36 = vld [vmem:[#allocation4 + $0x168] sm:$0xff]  ;;  %v72_v38 = vld [vmem:[#allocation4 + $0x178] sm:$0x3]  ;;  %v769_v46 = vmul.f32 %v71_v41, %v71_v41  ;;  %v73_v56 = vld [vmem:[#allocation4 + $0x180] sm:$0xff] }
  0x17   :  { %168 = vst [vmem:[#allocation2 + $0x198] sm:$0x3] %v114_v26  ;;  %v767_v42 = vmul.f32 %v70_v36, %v70_v36  ;;  %v126_v44 = vmul.f32 %v72_v38, %v72_v38  ;;  %v189_v47 = vld [vmem:[#allocation2 + $0x10] sm:$0x3]  ;;  %v192_v48 = vld [vmem:[#allocation2 + $0x108] sm:$0x3]  ;;  %v771_v1 = vmul.f32 %v73_v56, %v73_v56 }
  0x18   :  { %174 = vst [vmem:[#allocation2 + $0x30] sm:$0x3] %v120_v35  ;;  %v195_v50 = vld [vmem:[#allocation2 + $0x58] sm:$0x3]  ;;  %v198_v52 = vld [vmem:[#allocation2 + $0x1a0] sm:$0x3]  ;;  %v284_v35 = vadd.f32 %v739_v51, %v707_v3  ;;  %v288_v51 = vadd.f32 %v745_v61, %v713_v13 }
  0x19   :  { %180 = vst [vmem:[#allocation2 + $0x68] sm:$0x3] %v126_v44  ;;  %v201_v53 = vld [vmem:[#allocation2 + $0x28] sm:$0x3]  ;;  %v204_v54 = vld [vmem:[#allocation2 + $0x50] sm:$0x3]  ;;  %v285_v44 = vadd.f32 %v741_v55, %v709_v7 }
  0x1a   :  { %213 = vst [vmem:[#allocation3 + $0x10] sm:$0x3] %v189_v47  ;;  %v207_v58 = vld [vmem:[#allocation2 + $0xc8] sm:$0x3]  ;;  %v75_v59 = vld [vmem:[#allocation4 + $0x190] sm:$0x3]  ;;  %v381_v7 = vadd.f32 %v284_v35, %v711_v9 }
  0x1b   :  { %216 = vst [vmem:[#allocation3 + $0x28] sm:$0x3] %v192_v48  ;;  %v210_v60 = vld [vmem:[#allocation2 + $0x8] sm:$0x3]  ;;  %v74_v62 = vld [vmem:[#allocation4 + $0x188] sm:$0xff]  ;;  %v129_v2 = vmul.f32 %v75_v59, %v75_v59  ;;  %v382_v55 = vadd.f32 %v285_v44, %v713_v13  ;;  %v290_v59 = vadd.f32 %v747_v63, %v715_v15  ;;  %v293_v13 = vadd.f32 %v751_v6, %v719_v21 }
  0x1c   :  { %219 = vst [vmem:[#allocation3 + $0x40] sm:$0x3] %v195_v50  ;;  %v262_v0 = vld [vmem:[#allocation2 + $0x128] sm:$0x3]  ;;  %v265_v5 = vld [vmem:[#allocation2 + $0x118] sm:$0x3]  ;;  %v773_v8 = vmul.f32 %v74_v62, %v74_v62  ;;  %v297_v6 = vadd.f32 %v757_v22, %v725_v31 }
  0x1d   :  { %222 = vst [vmem:[#allocation3 + $0x58] sm:$0x3] %v198_v52  ;;  %v268_v11 = vld [vmem:[#allocation2 + $0x130] sm:$0x3]  ;;  %v271_v18 = vld [vmem:[#allocation2 + $0xe8] sm:$0x3] }
  0x1e   :  { %225 = vst [vmem:[#allocation3 + $0x70] sm:$0x3] %v201_v53  ;;  %v274_v26 = vld [vmem:[#allocation2 + $0xb8] sm:$0x3]  ;;  %v359_v62 = vld [vmem:[#allocation2 + $0x108] sm:$0x3] }
  0x1f   :  { %228 = vst [vmem:[#allocation3 + $0x88] sm:$0x3] %v204_v54  ;;  %v277_v32 = vld [vmem:[#allocation2 + $0x198] sm:$0x3]  ;;  %v280_v41 = vld [vmem:[#allocation2 + $0x30] sm:$0x3]  ;;  %v287_v54 = vadd.f32 %v743_v57, %v711_v9  ;;  %v291_v57 = vadd.f32 %v749_v4, %v717_v19  ;;  %v294_v4 = vadd.f32 %v753_v12, %v721_v25 }
  0x20   :  { %231 = vst [vmem:[#allocation3 + $0xa0] sm:$0x3] %v207_v58  ;;  %v283_v50 = vld [vmem:[#allocation2 + $0x68] sm:$0x3] }
  0x21   :  { %234 = vst [vmem:[#allocation3 + $0xb8] sm:$0x3] %v210_v60  ;;  %v237_v10 = vld [vmem:[#allocation3 + $0x10] sm:$0x3]  ;;  %v391_v12 = vadd.f32 %v294_v4, %v725_v31 }
  0x22   :  { %v286_v14 = vadd.f32 %v262_v0, %v237_v10  ;;  %v240_v17 = vld [vmem:[#allocation3 + $0x28] sm:$0x3]  ;;  %183 = vst [vmem:[#allocation2 + $0x88] sm:$0x3] %v129_v2  ;;  %v384_v0 = vadd.f32 %v287_v54, %v715_v15  ;;  %v385_v2 = vadd.f32 %v288_v51, %v717_v19  ;;  %v388_v15 = vadd.f32 %v291_v57, %v721_v25 }
  0x23   :  { %v289_v20 = vadd.f32 %v265_v5, %v240_v17  ;;  %v243_v23 = vld [vmem:[#allocation3 + $0x40] sm:$0x3]  ;;  %405 = vst [vmem:[#allocation3] sm:$0xff] %v381_v7  ;;  %v362_v5 = vld [vmem:[#allocation2 + $0x58] sm:$0x3]  ;;  %v296_v19 = vadd.f32 %v755_v16, %v723_v27  ;;  %v299_v25 = vadd.f32 %v759_v24, %v727_v33  ;;  %v300_v16 = vadd.f32 %v761_v30, %v729_v37 }
  0x24   :  { %v292_v28 = vadd.f32 %v268_v11, %v243_v23  ;;  %v246_v29 = vld [vmem:[#allocation3 + $0x58] sm:$0x3]  ;;  %310 = vst [vmem:[#allocation3 + $0x10] sm:$0x3] %v286_v14  ;;  %v387_v11 = vadd.f32 %v290_v59, %v719_v21  ;;  %v365_v14 = vld [vmem:[#allocation2 + $0x1a0] sm:$0x3]  ;;  %v302_v24 = vadd.f32 %v763_v34, %v731_v39  ;;  %v303_v30 = vadd.f32 %v765_v40, %v733_v43 }
  0x25   :  { %v295_v36 = vadd.f32 %v271_v18, %v246_v29  ;;  %v249_v38 = vld [vmem:[#allocation3 + $0x70] sm:$0x3]  ;;  %313 = vst [vmem:[#allocation3 + $0x28] sm:$0x3] %v289_v20  ;;  %v390_v20 = vadd.f32 %v293_v13, %v723_v27  ;;  %v368_v21 = vld [vmem:[#allocation2 + $0x28] sm:$0x3]  ;;  %v394_v27 = vadd.f32 %v297_v6, %v729_v37  ;;  %v397_v37 = vadd.f32 %v300_v16, %v733_v43 }
  0x26   :  { %v298_v47 = vadd.f32 %v274_v26, %v249_v38  ;;  %v252_v48 = vld [vmem:[#allocation3 + $0x88] sm:$0x3]  ;;  %316 = vst [vmem:[#allocation3 + $0x40] sm:$0x3] %v292_v28  ;;  %v393_v28 = vadd.f32 %v296_v19, %v727_v33  ;;  %v396_v33 = vadd.f32 %v299_v25, %v731_v39  ;;  %v305_v34 = vadd.f32 %v767_v42, %v735_v45 }
  0x27   :  { %v301_v52 = vadd.f32 %v277_v32, %v252_v48  ;;  %v255_v53 = vld [vmem:[#allocation3 + $0xa0] sm:$0x3]  ;;  %319 = vst [vmem:[#allocation3 + $0x58] sm:$0x3] %v295_v36  ;;  %v374_v48 = vld [vmem:[#allocation2 + $0xc8] sm:$0x3]  ;;  %v306_v39 = vadd.f32 %v769_v46, %v737_v49  ;;  %v399_v40 = vadd.f32 %v302_v24, %v735_v45  ;;  %v400_v51 = vadd.f32 %v303_v30, %v737_v49 }
  0x28   :  { %v304_v56 = vadd.f32 %v280_v41, %v255_v53  ;;  %v258_v3 = vld [vmem:[#allocation3 + $0xb8] sm:$0x3]  ;;  %322 = vst [vmem:[#allocation3 + $0x70] sm:$0x3] %v298_v47  ;;  %v371_v32 = vld [vmem:[#allocation2 + $0x50] sm:$0x3]  ;;  %v402_v46 = vadd.f32 %v305_v34, %v771_v1 }
  0x29   :  { %v307_v58 = vadd.f32 %v283_v50, %v258_v3  ;;  %325 = vst [vmem:[#allocation3 + $0x88] sm:$0x3] %v301_v52  ;;  %v380_v57 = vld [vmem:[#allocation2 + $0x88] sm:$0x3] }
  0x2a   :  { %328 = vst [vmem:[#allocation3 + $0xa0] sm:$0x3] %v304_v56 }
  0x2b   :  { %331 = vst [vmem:[#allocation3 + $0xb8] sm:$0x3] %v307_v58  ;;  %v334_v60 = vld [vmem:[#allocation3 + $0x10] sm:$0x3]  ;;  %v377_v58 = vld [vmem:[#allocation2 + $0x8] sm:$0x3] }
  0x2c   :  { %v383_v61 = vadd.f32 %v359_v62, %v334_v60  ;;  %v337_v9 = vld [vmem:[#allocation3 + $0x28] sm:$0x3]  ;;  %406 = vst [vmem:[#allocation3 + $0x8] sm:$0xff] %v382_v55 }
  0x2d   :  { %v386_v63 = vadd.f32 %v362_v5, %v337_v9  ;;  %v340_v10 = vld [vmem:[#allocation3 + $0x40] sm:$0x3]  ;;  %408 = vst [vmem:[#allocation3 + $0x18] sm:$0xff] %v384_v0  ;;  %v403_v0 = vadd.f32 %v306_v39, %v773_v8 }
  0x2e   :  { %407 = vst [vmem:[#allocation3 + $0x10] sm:$0x3] %v383_v61  ;;  %v389_v17 = vadd.f32 %v365_v14, %v340_v10  ;;  %v343_v18 = vld [vmem:[#allocation3 + $0x58] sm:$0x3] }
  0x2f   :  { %409 = vst [vmem:[#allocation3 + $0x20] sm:$0xff] %v385_v2  ;;  %v392_v23 = vadd.f32 %v368_v21, %v343_v18  ;;  %v346_v26 = vld [vmem:[#allocation3 + $0x70] sm:$0x3] }
  0x30   :  { %410 = vst [vmem:[#allocation3 + $0x28] sm:$0x3] %v386_v63  ;;  %v395_v36 = vadd.f32 %v371_v32, %v346_v26  ;;  %v349_v38 = vld [vmem:[#allocation3 + $0x88] sm:$0x3] }
  0x31   :  { %411 = vst [vmem:[#allocation3 + $0x30] sm:$0xff] %v387_v11  ;;  %v398_v53 = vadd.f32 %v374_v48, %v349_v38  ;;  %v352_v54 = vld [vmem:[#allocation3 + $0xa0] sm:$0x3] }
  0x32   :  { %412 = vst [vmem:[#allocation3 + $0x38] sm:$0xff] %v388_v15  ;;  %v401_v55 = vadd.f32 %v377_v58, %v352_v54  ;;  %v355_v59 = vld [vmem:[#allocation3 + $0xb8] sm:$0x3] }
  0x33   :  { %413 = vst [vmem:[#allocation3 + $0x40] sm:$0x3] %v389_v17  ;;  %v429_v22 = vld [vmem:[#allocation3] ss:$2 sm:$0xff]  ;;  %v445_v29 = vld [vmem:[#allocation3 + $0x1] ss:$2 sm:$0xff]  ;;  %v404_v9 = vadd.f32 %v380_v57, %v355_v59 }
  0x34   :  { %414 = vst [vmem:[#allocation3 + $0x48] sm:$0xff] %v390_v20  ;;  %v460_v31 = vadd.f32 %v445_v29, %v429_v22 }
  0x35   :  { %v469_v35 = vld [vmem:[#allocation3 + $0x2] ss:$2 sm:$0xff]  ;;  %415 = vst [vmem:[#allocation3 + $0x50] sm:$0xff] %v391_v12 }
  0x36   :  { %416 = vst [vmem:[#allocation3 + $0x58] sm:$0x3] %v392_v23  ;;  %v814_v41 = vadd.f32 %v469_v35, %v460_v31  ;;  %v431_v44 = vld [vmem:[#allocation3 + $0x18] ss:$2 sm:$0xff]  ;;  %v447_v47 = vld [vmem:[#allocation3 + $0x19] ss:$2 sm:$0xff] }
  0x37   :  { %417 = vst [vmem:[#allocation3 + $0x60] sm:$0xff] %v393_v28  ;;  %v461_v50 = vadd.f32 %v447_v47, %v431_v44  ;;  %v471_v52 = vld [vmem:[#allocation3 + $0x1a] ss:$2 sm:$0xff] }
  0x38   :  { %418 = vst [vmem:[#allocation3 + $0x68] sm:$0xff] %v394_v27  ;;  %619 = vrsqrt.f32 %v814_v41  ;;  %vm499_vm0 = vcmp.eq.f32.partialorder %v814_v41, inf  ;;  %vm501_vm1 = vcmp.eq.f32.partialorder %v814_v41, 0.0  ;;  %v502_v47 = vand.u32 2147483648, %v814_v41 }
  0x39   :  { %419 = vst [vmem:[#allocation3 + $0x70] sm:$0x3] %v395_v36  ;;  %v823_v56 = vadd.f32 %v471_v52, %v461_v50  ;;  %v433_v43 = vld [vmem:[#allocation3 + $0x30] ss:$2 sm:$0xff]  ;;  %v449_v3 = vld [vmem:[#allocation3 + $0x31] ss:$2 sm:$0xff] }
  0x3a   :  { %420 = vst [vmem:[#allocation3 + $0x78] sm:$0xff] %v396_v33  ;;  %v462_v42 = vadd.f32 %v449_v3, %v433_v43  ;;  %v473_v7 = vld [vmem:[#allocation3 + $0x32] ss:$2 sm:$0xff] }
  0x3b   :  { %421 = vst [vmem:[#allocation3 + $0x80] sm:$0xff] %v397_v37  ;;  %621 = vrsqrt.f32 %v823_v56  ;;  %vm511_vm2 = vcmp.eq.f32.partialorder %v823_v56, inf  ;;  %vm513_vm3 = vcmp.eq.f32.partialorder %v823_v56, 0.0  ;;  %v514_v3 = vand.u32 2147483648, %v823_v56 }
  0x3c   :  { %422 = vst [vmem:[#allocation3 + $0x88] sm:$0x3] %v398_v53  ;;  %v828_v45 = vadd.f32 %v473_v7, %v462_v42  ;;  %v435_v60 = vld [vmem:[#allocation3 + $0x48] ss:$2 sm:$0xff]  ;;  %v451_v62 = vld [vmem:[#allocation3 + $0x49] ss:$2 sm:$0xff] }
  0x3d   :  { %423 = vst [vmem:[#allocation3 + $0x90] sm:$0xff] %v399_v40  ;;  %v463_v49 = vadd.f32 %v451_v62, %v435_v60  ;;  %v475_v61 = vld [vmem:[#allocation3 + $0x4a] ss:$2 sm:$0xff] }
  0x3e   :  { %v620_v2 = vpop.eup %619  ;;  %424 = vst [vmem:[#allocation3 + $0x98] sm:$0xff] %v400_v51  ;;  %623 = vrsqrt.f32 %v828_v45  ;;  %vm523_vm4 = vcmp.eq.f32.partialorder %v828_v45, inf  ;;  %v526_v62 = vand.u32 2147483648, %v828_v45  ;;  %vm525_vm5 = vcmp.eq.f32.partialorder %v828_v45, 0.0 }
  0x3f   :  { %425 = vst [vmem:[#allocation3 + $0xa0] sm:$0x3] %v401_v55  ;;  %v493_v5 = vmul.f32 %v620_v2, %v814_v41  ;;  %v833_v13 = vadd.f32 %v475_v61, %v463_v49  ;;  %v437_v1 = vld [vmem:[#allocation3 + $0x60] ss:$2 sm:$0xff]  ;;  %v453_v63 = vld [vmem:[#allocation3 + $0x61] ss:$2 sm:$0xff] }
  0x40   :  { %426 = vst [vmem:[#allocation3 + $0xa8] sm:$0xff] %v402_v46  ;;  %v464_v10 = vadd.f32 %v453_v63, %v437_v1  ;;  %v477_v4 = vld [vmem:[#allocation3 + $0x62] ss:$2 sm:$0xff] }
  0x41   :  { %v622_v11 = vpop.eup %621  ;;  %427 = vst [vmem:[#allocation3 + $0xb0] sm:$0xff] %v403_v0  ;;  %v494_v8 = vmul.f32 %v620_v2, %v493_v5  ;;  %625 = vrsqrt.f32 %v833_v13  ;;  %vm535_vm6 = vcmp.eq.f32.partialorder %v833_v13, inf  ;;  %vm537_vm7 = vcmp.eq.f32.partialorder %v833_v13, 0.0 }
  0x42   :  { %428 = vst [vmem:[#allocation3 + $0xb8] sm:$0x3] %v404_v9  ;;  %v505_v15 = vmul.f32 %v622_v11, %v823_v56  ;;  %v837_v14 = vadd.f32 %v477_v4, %v464_v10  ;;  %v439_v19 = vld [vmem:[#allocation3 + $0x78] ss:$2 sm:$0xff]  ;;  %v455_v18 = vld [vmem:[#allocation3 + $0x79] ss:$2 sm:$0xff] }
  0x43   :  { %v495_v17 = vmul.f32 0.5, %v494_v8  ;;  %v479_v12 = vld [vmem:[#allocation3 + $0x7a] ss:$2 sm:$0xff]  ;;  %v465_v23 = vadd.f32 %v455_v18, %v439_v19  ;;  %v538_v4 = vand.u32 2147483648, %v833_v13 }
  0x44   :  { %v624_v6 = vpop.eup %623  ;;  %v506_v20 = vmul.f32 %v622_v11, %v505_v15  ;;  %627 = vrsqrt.f32 %v837_v14  ;;  %vm547_vm8 = vcmp.eq.f32.partialorder %v837_v14, inf  ;;  %v550_v18 = vand.u32 2147483648, %v837_v14 }
  0x45   :  { %v496_v21 = vsub.f32 1.5, %v495_v17  ;;  %v517_v25 = vmul.f32 %v624_v6, %v828_v45  ;;  %v441_v26 = vld [vmem:[#allocation3 + $0x90] ss:$2 sm:$0xff]  ;;  %v457_v16 = vld [vmem:[#allocation3 + $0x91] ss:$2 sm:$0xff]  ;;  %v842_v35 = vadd.f32 %v479_v12, %v465_v23  ;;  %vm549_vm9 = vcmp.eq.f32.partialorder %v837_v14, 0.0 }
  0x46   :  { %v507_v28 = vmul.f32 0.5, %v506_v20  ;;  %v466_v22 = vadd.f32 %v457_v16, %v441_v26  ;;  %v481_v29 = vld [vmem:[#allocation3 + $0x92] ss:$2 sm:$0xff] }
  0x47   :  { %v626_v27 = vpop.eup %625  ;;  %v497_v32 = vmul.f32 %v620_v2, %v496_v21  ;;  %v518_v31 = vmul.f32 %v624_v6, %v517_v25  ;;  %629 = vrsqrt.f32 %v842_v35  ;;  %vm559_vm10 = vcmp.eq.f32.partialorder %v842_v35, inf }
  0x48   :  { %v508_v24 = vsub.f32 1.5, %v507_v28  ;;  %v529_v36 = vmul.f32 %v626_v27, %v833_v13  ;;  %v845_v38 = vadd.f32 %v481_v29, %v466_v22  ;;  %v443_v53 = vld [vmem:[#allocation3 + $0xa8] ss:$2 sm:$0xff]  ;;  %v459_v54 = vld [vmem:[#allocation3 + $0xa9] ss:$2 sm:$0xff]  ;;  %v562_v22 = vand.u32 2147483648, %v842_v35 }
  0x49   :  { %v498_v30 = vmul.f32 %v497_v32, %v814_v41  ;;  %v519_v33 = vmul.f32 0.5, %v518_v31  ;;  %v483_v58 = vld [vmem:[#allocation3 + $0xaa] ss:$2 sm:$0xff]  ;;  %v467_v55 = vadd.f32 %v459_v54, %v443_v53  ;;  %vm561_vm11 = vcmp.eq.f32.partialorder %v842_v35, 0.0 }
  0x4a   :  { %v628_v44 = vpop.eup %627  ;;  %v509_v37 = vmul.f32 %v622_v11, %v508_v24  ;;  %v530_v48 = vmul.f32 %v626_v27, %v529_v36  ;;  %631 = vrsqrt.f32 %v845_v38  ;;  %vm571_vm12 = vcmp.eq.f32.partialorder %v845_v38, inf }
  0x4b   :  { %v500_v50 = vsel %vm499_vm0, %v814_v41, %v498_v30  ;;  %v520_v52 = vsub.f32 1.5, %v519_v33  ;;  %v541_v34 = vmul.f32 %v628_v44, %v837_v14  ;;  %v865_v61 = vadd.f32 %v483_v58, %v467_v55 }
  0x4c   :  { %v503_v39 = vsel %vm501_vm1, %v502_v47, %v500_v50  ;;  %v510_v40 = vmul.f32 %v509_v37, %v823_v56  ;;  %v531_v43 = vmul.f32 0.5, %v530_v48  ;;  %v574_v31 = vand.u32 2147483648, %v845_v38 }
  0x4d   :  { %588 = vst [vmem:[#allocation7] sm:$0xff] %v503_v39  ;;  %v521_v51 = vmul.f32 %v624_v6, %v520_v52  ;;  %v542_v41 = vmul.f32 %v628_v44, %v541_v34  ;;  %v630_v59 = vpop.eup %629  ;;  %633 = vrsqrt.f32 %v865_v61  ;;  %vm573_vm13 = vcmp.eq.f32.partialorder %v845_v38, 0.0 }
  0x4e   :  { %v512_v42 = vsel %vm511_vm2, %v823_v56, %v510_v40  ;;  %v532_v7 = vsub.f32 1.5, %v531_v43  ;;  %v553_v49 = vmul.f32 %v630_v59, %v842_v35  ;;  %vm583_vm14 = vcmp.eq.f32.partialorder %v865_v61, inf }
  0x4f   :  { %v515_v57 = vsel %vm513_vm3, %v514_v3, %v512_v42  ;;  %v522_v46 = vmul.f32 %v521_v51, %v828_v45  ;;  %v543_v60 = vmul.f32 0.5, %v542_v41  ;;  %v586_v47 = vand.u32 2147483648, %v865_v61 }
  0x50   :  { %589 = vst [vmem:[#allocation7 + $0x8] sm:$0xff] %v515_v57  ;;  %v533_v0 = vmul.f32 %v626_v27, %v532_v7  ;;  %v632_v2 = vpop.eup %631  ;;  %v554_v63 = vmul.f32 %v630_v59, %v553_v49  ;;  %vm585_vm15 = vcmp.eq.f32.partialorder %v865_v61, 0.0 }
  0x51   :  { %v524_v56 = vsel %vm523_vm4, %v828_v45, %v522_v46  ;;  %v544_v9 = vsub.f32 1.5, %v543_v60  ;;  %v565_v10 = vmul.f32 %v632_v2, %v845_v38 }
  0x52   :  { %v527_v5 = vsel %vm525_vm5, %v526_v62, %v524_v56  ;;  %v534_v1 = vmul.f32 %v533_v0, %v833_v13  ;;  %v555_v45 = vmul.f32 0.5, %v554_v63 }
  0x53   :  { %590 = vst [vmem:[#allocation7 + $0x10] sm:$0xff] %v527_v5  ;;  %v545_v11 = vmul.f32 %v628_v44, %v544_v9  ;;  %v566_v15 = vmul.f32 %v632_v2, %v565_v10 }
  0x54   :  { %v536_v8 = vsel %vm535_vm6, %v833_v13, %v534_v1  ;;  %v556_v6 = vsub.f32 1.5, %v555_v45  ;;  %v634_v13 = vpop.eup %633 }
  0x55   :  { %v539_v19 = vsel %vm537_vm7, %v538_v4, %v536_v8  ;;  %v546_v17 = vmul.f32 %v545_v11, %v837_v14  ;;  %v567_v20 = vmul.f32 0.5, %v566_v15  ;;  %v577_v28 = vmul.f32 %v634_v13, %v865_v61 }
  0x56   :  { %591 = vst [vmem:[#allocation7 + $0x18] sm:$0xff] %v539_v19  ;;  %v557_v25 = vmul.f32 %v630_v59, %v556_v6 }
  0x57   :  { %v548_v12 = vsel %vm547_vm8, %v837_v14, %v546_v17  ;;  %v568_v23 = vsub.f32 1.5, %v567_v20  ;;  %v578_v27 = vmul.f32 %v634_v13, %v577_v28 }
  0x58   :  { %v551_v21 = vsel %vm549_vm9, %v550_v18, %v548_v12  ;;  %v558_v26 = vmul.f32 %v557_v25, %v842_v35 }
  0x59   :  { %592 = vst [vmem:[#allocation7 + $0x20] sm:$0xff] %v551_v21  ;;  %v569_v16 = vmul.f32 %v632_v2, %v568_v23  ;;  %v579_v36 = vmul.f32 0.5, %v578_v27 }
  0x5a   :  { %v560_v29 = vsel %vm559_vm10, %v842_v35, %v558_v26 }
  0x5b   :  { %v570_v14 = vmul.f32 %v569_v16, %v845_v38  ;;  %v563_v32 = vsel %vm561_vm11, %v562_v22, %v560_v29  ;;  %v580_v33 = vsub.f32 1.5, %v579_v36 }
  0x5c   :  { %593 = vst [vmem:[#allocation7 + $0x28] sm:$0xff] %v563_v32 }
  0x5d   :  { %v572_v24 = vsel %vm571_vm12, %v845_v38, %v570_v14  ;;  %v581_v44 = vmul.f32 %v634_v13, %v580_v33 }
  0x5e   :  { %v575_v30 = vsel %vm573_vm13, %v574_v31, %v572_v24 }
  0x5f   :  { %594 = vst [vmem:[#allocation7 + $0x30] sm:$0xff] %v575_v30  ;;  %v582_v35 = vmul.f32 %v581_v44, %v865_v61 }
  0x61   :  { %v584_v37 = vsel %vm583_vm14, %v865_v61, %v582_v35 }
  0x62   :  { %v587_v38 = vsel %vm585_vm15, %v586_v47, %v584_v37 }
  0x63   :  { %595 = vst [vmem:[#allocation7 + $0x38] sm:$0xff] %v587_v38 }
  0x64   :  { %608 = dma.vmem_to_hbm [thread:$0]  %s601_s13, 1024, %s603_s16, [#allocation6], %s688_s11, %s688_s11, %s689_s12  }
  0x65   :  { %685 = dma.done.wait [#allocation6], 1024  }
  0x66   :  { %686 = vsyncadd [#allocation6], 4294966272 }
  0x67   :  { %613 = vsyncpa [#allocation5], 1 }
  0x68   :  { %614 = vsyncpa [#allocation6], 1 }

</bundles_post_ra>
